<compile_context>
chip_gen: v7x
topology: tpu7x:2x2x1
jax: 0.10.0
libtpu: 0.0.40
codegen_flags: <defaults>
</compile_context>

<pallas_src>
import jax
import jax.numpy as jnp
from jax.experimental import pallas as pl
from jax.experimental.pallas import tpu as pltpu


def mf_kernel(ids_ref, tab_ref, o_ref):
    # ids_ref: (1, 1, 2*TB) int32  lanes [0,TB) = user ids,
    #                              lanes [TB,2TB) = song ids + NU (pre-offset)
    # tab_ref: (D, NU+NS)   f32    concatenated [U^T | S^T], VMEM-resident
    # o_ref:   (1, 1, TB)   f32    ratings for this batch tile
    two_tb = ids_ref.shape[-1]
    tb = two_tb // 2
    n_total = tab_ref.shape[-1]

    ids = ids_ref[0]                                        # (1, 2*TB)

    # One fused one-hot with the batch in lanes: oh[n, b] = (id[b] == n).
    rows = jax.lax.broadcasted_iota(jnp.int32, (n_total, two_tb), 0)
    oh = (rows == ids).astype(jnp.float32)                  # (NU+NS, 2*TB)

    # Block-diagonal gather via a single MXU pass:
    # (D, NU+NS) @ (NU+NS, 2*TB) -> (D, 2*TB); batch stays lane-dense.
    g = jnp.dot(tab_ref[...], oh, preferred_element_type=jnp.float32)
    gu = g[:, :tb]                                          # (D, TB) user rows
    gs = g[:, tb:]                                          # (D, TB) song rows

    # Row-wise dot product: VPU multiply + sublane reduce over D.
    dot = jnp.sum(gu * gs, axis=0, keepdims=True)           # (1, TB)

    # rating = 10 * sigmoid(dot); exp and reciprocal both sit on the EUP slot.
    o_ref[0] = 10.0 * pl.reciprocal(1.0 + jnp.exp(-dot), approx=False)


def prepare_tables(user_emb, song_emb):
    """One-time layout plumbing (pay once, not per forward call):
    returns the concatenated transposed table (D, NU+NS) in float32."""
    u_t = user_emb.T.astype(jnp.float32)                    # (D, NU)
    s_t = song_emb.T.astype(jnp.float32)                    # (D, NS)
    return jnp.concatenate([u_t, s_t], axis=1)              # (D, NU+NS)


def _pick_tb(batch, tb_max=512, lane=128):
    """Batch tile: multiple of 128, capped at tb_max; for large batches aim
    for >= 2 grid steps so the 'parallel' axis shards across v7x's 2 TCs."""
    if batch <= lane:
        return lane
    half = pl.cdiv(pl.cdiv(batch, 2), lane) * lane
    return max(lane, min(tb_max, half))


def matrix_factorization_forward(table_t, num_users, user_id, song_id, *, tb_max=512):
    B = user_id.shape[0]
    d, n_total = table_t.shape
    tb = _pick_tb(B, tb_max)
    b_pad = pl.cdiv(B, tb) * tb
    nb = b_pad // tb

    # Pack ids into a single lane-dense input: per tile, first TB lanes are the
    # user ids, next TB lanes are the song ids offset by NU (padded tail uses
    # row 0 / row NU, both valid; padded ratings are sliced off below).
    uid = jnp.pad(user_id.astype(jnp.int32), (0, b_pad - B)).reshape(nb, 1, tb)
    sid = (jnp.pad(song_id.astype(jnp.int32), (0, b_pad - B)) + num_users
           ).reshape(nb, 1, tb)
    ids = jnp.concatenate([uid, sid], axis=-1)              # (nb, 1, 2*tb)

    out = pl.pallas_call(
        mf_kernel,
        out_shape=jax.ShapeDtypeStruct((nb, 1, tb), jnp.float32),
        grid_spec=pltpu.PrefetchScalarGridSpec(
            num_scalar_prefetch=0,
            grid=(nb,),
            in_specs=[
                # one DMA per step for both id streams
                pl.BlockSpec((1, 1, 2 * tb), lambda i: (i, 0, 0)),
                # whole concatenated table, single-buffered, VMEM-resident
                pl.BlockSpec(memory_space=pltpu.MemorySpace.VMEM),
            ],
            out_specs=pl.BlockSpec((1, 1, tb), lambda i: (i, 0, 0)),
        ),
        compiler_params=pltpu.CompilerParams(
            dimension_semantics=("parallel",),       # disjoint output tiles
            vmem_limit_bytes=32 * 1024 * 1024,       # safe on v7x's 64 MiB VMEM
        ),
    )(ids, table_t)

    return out.reshape(-1)[:B]


if __name__ == "__main__":
    # Matches nn.Embedding(num_users/num_songs, 32) with weight ~ N(0, 0.1)
    num_users, num_songs, d = 64, 128, 32
    batch = 8

    key = jax.random.PRNGKey(0)
    k_u, k_s, k_uid, k_sid = jax.random.split(key, 4)

    user_emb = (0.1 * jax.random.normal(k_u, (num_users, d))).astype(jnp.float32)
    song_emb = (0.1 * jax.random.normal(k_s, (num_songs, d))).astype(jnp.float32)

    user_id = jax.random.randint(k_uid, (batch,), 0, num_users, dtype=jnp.int32)
    song_id = jax.random.randint(k_sid, (batch,), 0, num_songs, dtype=jnp.int32)

    # Layout plumbing done once, outside the per-call path.
    table_t = prepare_tables(user_emb, song_emb)

    rating = matrix_factorization_forward(table_t, num_users, user_id, song_id)
    rating = jax.block_until_ready(rating)

    # Pure-JAX reference check
    u = user_emb[user_id]
    s = song_emb[song_id]
    ref = 10.0 * jax.nn.sigmoid(jnp.sum(u * s, axis=1))
    assert rating.shape == (batch,)
    assert jnp.allclose(rating, ref, atol=1e-5, rtol=1e-5), (rating, ref)

    print("KERNEL_OK")
</pallas_src>

<mosaic_0001>
module attributes {stable_mosaic.version = 11 : i64} {
  func.func @mf_kernel(%arg0: i32, %arg1: memref<1x1x256xi32, #tpu.memory_space<vmem>>, %arg2: memref<32x192xf32, #tpu.memory_space<vmem>>, %arg3: memref<1x1x128xf32, #tpu.memory_space<vmem>>) attributes {dimension_semantics = [#tpu.dimension_semantics<parallel>], iteration_bounds = array<i64: 1>, scalar_prefetch = 0 : i64, scratch_operands = 0 : i64, tpu.core_type = #tpu.core_type<tc>, window_params = [{transform_indices = @transform_0, window_bounds = array<i64: 1, 1, 256>}, {pipeline_mode = #tpu.pipeline_mode<synchronous>, transform_indices = @transform_1, window_bounds = array<i64: 32, 192>}, {transform_indices = @transform_2, window_bounds = array<i64: 1, 1, 128>}]} {
    %c0 = arith.constant 0 : index
    %c0_0 = arith.constant 0 : index
    %c0_1 = arith.constant 0 : index
    %0 = vector.load %arg1[%c0, %c0_0, %c0_1] : memref<1x1x256xi32, #tpu.memory_space<vmem>>, vector<1x1x256xi32>
    %1 = vector.shape_cast %0 : vector<1x1x256xi32> to vector<1x256xi32>
    %2 = tpu.iota {dimensions = array<i32: 0>} : vector<192x256xi32>
    %3 = vector.broadcast %1 : vector<1x256xi32> to vector<192x256xi32>
    %4 = arith.cmpi eq, %2, %3 : vector<192x256xi32>
    %5 = arith.extui %4 : vector<192x256xi1> to vector<192x256xi32>
    %6 = arith.sitofp %5 : vector<192x256xi32> to vector<192x256xf32>
    %c0_2 = arith.constant 0 : index
    %c0_3 = arith.constant 0 : index
    %7 = vector.load %arg2[%c0_2, %c0_3] : memref<32x192xf32, #tpu.memory_space<vmem>>, vector<32x192xf32>
    %cst = arith.constant dense<0.000000e+00> : vector<32x256xf32>
    %8 = tpu.matmul %7, %6, %cst {dimension_numbers = #tpu.dot_dimension_numbers<[1], [0], [0], [1], [0, 0, 1, 1], [], []>} : vector<32x192xf32>, vector<192x256xf32>, vector<32x256xf32> -> vector<32x256xf32>
    %9 = vector.extract_strided_slice %8 {offsets = [0, 0], sizes = [32, 128], strides = [1, 1]} : vector<32x256xf32> to vector<32x128xf32>
    %10 = vector.extract_strided_slice %8 {offsets = [0, 128], sizes = [32, 128], strides = [1, 1]} : vector<32x256xf32> to vector<32x128xf32>
    %11 = arith.mulf %9, %10 : vector<32x128xf32>
    %cst_4 = arith.constant dense<0.000000e+00> : vector<128xf32>
    %12 = vector.multi_reduction <add>, %11, %cst_4 [0] : vector<32x128xf32> to vector<128xf32>
    %13 = vector.shape_cast %12 : vector<128xf32> to vector<1x128xf32>
    %cst_5 = arith.constant 0.000000e+00 : f32
    %14 = vector.broadcast %cst_5 : f32 to vector<1x128xf32>
    %15 = arith.subf %14, %13 : vector<1x128xf32>
    %16 = math.exp %15 : vector<1x128xf32>
    %cst_6 = arith.constant 1.000000e+00 : f32
    %17 = vector.broadcast %cst_6 : f32 to vector<1x128xf32>
    %18 = arith.addf %17, %16 : vector<1x128xf32>
    %19 = tpu.reciprocal %18 : vector<1x128xf32> -> vector<1x128xf32>
    %cst_7 = arith.constant 1.000000e+01 : f32
    %20 = vector.broadcast %cst_7 : f32 to vector<1x128xf32>
    %21 = arith.mulf %20, %19 : vector<1x128xf32>
    %c0_8 = arith.constant 0 : index
    %c0_9 = arith.constant 0 : index
    %c0_10 = arith.constant 0 : index
    %22 = vector.load %arg3[%c0_8, %c0_9, %c0_10] : memref<1x1x128xf32, #tpu.memory_space<vmem>>, vector<1x1x128xf32>
    %23 = vector.shape_cast %22 : vector<1x1x128xf32> to vector<1x128xf32>
    %24 = vector.shape_cast %21 : vector<1x128xf32> to vector<1x1x128xf32>
    tpu.vector_store %arg3[%c0_8, %c0_9, %c0_10], %24 {strides = array<i32>} : memref<1x1x128xf32, #tpu.memory_space<vmem>>, vector<1x1x128xf32>,
    return
  }
  func.func @transform_0(%arg0: i32) -> (i32, i32, i32) {
    %c0_i32 = arith.constant 0 : i32
    %c0_i32_0 = arith.constant 0 : i32
    %c0_i32_1 = arith.constant 0 : i32
    return %arg0, %c0_i32, %c0_i32_0 : i32, i32, i32
  }
  func.func @transform_1(%arg0: i32) -> (i32, i32) {
    %c0_i32 = arith.constant 0 : i32
    %c0_i32_0 = arith.constant 0 : i32
    %c0_i32_1 = arith.constant 0 : i32
    return %c0_i32, %c0_i32_0 : i32, i32
  }
  func.func @transform_2(%arg0: i32) -> (i32, i32, i32) {
    %c0_i32 = arith.constant 0 : i32
    %c0_i32_0 = arith.constant 0 : i32
    %c0_i32_1 = arith.constant 0 : i32
    return %arg0, %c0_i32, %c0_i32_0 : i32, i32, i32
  }
}

</mosaic_0001>

<bundles_post_ra>
// kernel: tpu_custom_call.1
= control target key start
LH: loop header
LB: loop body
LE: loop exit
PB: predicated region body
PF: predicated region fallthrough
CT: control target
= control target key end

     0   :  { %7 = vsyncpa [#allocation3], 0  ;;  %s813_s0 = inlined_call_operand.hbm [shape: s32[1,1,256], index: 0, kind: input, shape index: {}]   ;;  %s814_s1 = inlined_call_operand.hbm [shape: f32[32,192], index: 1, kind: input, shape index: {}]   ;;  %s815_s2 = inlined_call_operand.hbm [shape: f32[1,1,128], index: 2, kind: output, shape index: {}]  }
   0x1   :  { %8 = vsyncpa [#allocation6], 0 }
   0x2   :  { %9 = vsyncpa [#allocation4], 0  ;;  %s616_s9 = smov [#allocation2]   ;;  %s617_s11 = smov [#allocation5]  }
   0x3   :  { %s16_s10 = sshll.u32 %s616_s9, 4  ;;  %s25_s12 = sshll.u32 %s617_s11, 4  ;;  %s17_s10 = int_to_ptr.vmem [resolvable:$true] %s16_s10  ;;  %s637_s12 = int_to_ptr.vmem [resolvable:$true] %s25_s12 }
   0x4   :  { %s544_s15 = scalar_lea.hbm %s813_s0, 32 }
   0x5   :  { %p545_p0 = scmp.ne.s32.totalorder %s813_s0, %s544_s15  ;;  %p548_p1 = scmp.lt.u32.totalorder %s544_s15, %s813_s0 }
   0x7   :  { %p550_p2 = pnand %p548_p1, %p545_p0 }
   0x9   :  { %553 = shalt.err (!%p550_p2)
}
   0xa   :  { %s554_s20 = scalar_lea.vmem %s17_s10, 32  ;;  %p559_p4 = scmp.lt.s32.totalorder %s17_s10, %s17_s10 }
   0xb   :  { %p555_p3 = scmp.ne.s32.totalorder %s17_s10, %s554_s20  ;;  %p560_p5 = scmp.lt.s32.totalorder %s554_s20, %s554_s20 }
   0xd   :  { %p561_p6 = por %p560_p5, %p559_p4 }
   0xf   :  { %p562_p7 = pnand %p561_p6, %p555_p3 }
  0x11   :  { %565 = shalt.err (!%p562_p7)
}
  0x12   :  { %19 = dma.hbm_to_vmem [thread:$0]  %s813_s0, 32, %s17_s10, [#allocation3]  }
  0x13   :  { %s566_s25 = scalar_lea.hbm %s814_s1, 1024 }
  0x14   :  { %p567_p8 = scmp.ne.s32.totalorder %s814_s1, %s566_s25  ;;  %p570_p9 = scmp.lt.u32.totalorder %s566_s25, %s814_s1 }
  0x16   :  { %p572_p10 = pnand %p570_p9, %p567_p8 }
  0x18   :  { %575 = shalt.err (!%p572_p10)
}
  0x19   :  { %s576_s30 = scalar_lea.vmem %s637_s12, 1024  ;;  %p581_p12 = scmp.lt.s32.totalorder %s637_s12, %s637_s12 }
  0x1a   :  { %p577_p11 = scmp.ne.s32.totalorder %s637_s12, %s576_s30  ;;  %p582_p13 = scmp.lt.s32.totalorder %s576_s30, %s576_s30 }
  0x1c   :  { %p583_p0 = por %p582_p13, %p581_p12 }
  0x1e   :  { %p584_p1 = pnand %p583_p0, %p577_p11 }
  0x20   :  { %587 = shalt.err (!%p584_p1)
}
  0x21   :  { %s618_s0 = smov 256   ;;  %s619_s3 = smov 16  }
  0x22   :  { %31 = dma.hbm_to_vmem [thread:$0]  %s814_s1, 1024, %s637_s12, [#allocation6], %s618_s0, %s618_s0, %s619_s3  }
  0x23   :  { %610 = dma.done.wait [#allocation3], 32  }
  0x24   :  { %611 = vsyncadd [#allocation3], 4294967264 }
  0x25   :  { %612 = dma.done.wait [#allocation6], 1024  }
  0x26   :  { %613 = vsyncadd [#allocation6], 4294966272  ;;  %v39_v0 = vlaneseq  ;;  %vm224_vm0 = vcmask 523264   ;;  %v38_v5 = vld [vmem:[#allocation2] sm:$0x3]  ;;  %v217_v12 = vld [vmem:[#allocation5 + $0x8] sm:$0xff] }
  0x27   :  { %v221_v13 = vld [vmem:[#allocation5 + $0x28] sm:$0xff]  ;;  %458 = vmatprep.mubr.msk.f32.mxu0 %vm224_vm0, %v217_v12  ;;  %v620_v14 = vmov 1.0|1.0   ;;  %v216_v33 = vld [vmem:[#allocation5] sm:$0xff]  ;;  %v219_v35 = vld [vmem:[#allocation5 + $0x18] sm:$0xff]  ;;  %s621_s1 = smov [#allocation7]  }
  0x28   :  { %v668_v1 = vshrl.u32 %v39_v0, 7  ;;  %460 = vmatprep.mubr.msk.f32.mxu1 %vm224_vm0, %v221_v13  ;;  %v220_v34 = vld [vmem:[#allocation5 + $0x20] sm:$0xff]  ;;  %v223_v36 = vld [vmem:[#allocation5 + $0x38] sm:$0xff]  ;;  %v218_v37 = vld [vmem:[#allocation5 + $0x10] sm:$0xff]  ;;  %s352_s6 = sshll.u32 %s621_s1, 4  ;;  %s353_s6 = int_to_ptr.vmem [resolvable:$true] %s352_s6 }
  0x29   :  { %v222_v38 = vld [vmem:[#allocation5 + $0x30] sm:$0xff]  ;;  %s588_s7 = scalar_lea.vmem %s353_s6, 16  ;;  %s592_s8 = scalar_lea.vmem %s353_s6, 32 }
  0x2a   :  { %v66_v2 = vsub.s32 0, %v668_v1  ;;  %v70_v3 = vsub.s32 1, %v668_v1  ;;  %v41_v4 = vadd.s32 8, %v668_v1  ;;  %v42_v6 = vadd.s32 16, %v668_v1  ;;  %p589_p2 = scmp.ne.s32.totalorder %s353_s6, %s588_s7  ;;  %p593_p3 = scmp.lt.s32.totalorder %s353_s6, %s353_s6 }
  0x2b   :  { %v43_v7 = vadd.s32 24, %v668_v1  ;;  %v44_v10 = vadd.s32 32, %v668_v1  ;;  %v45_v11 = vadd.s32 40, %v668_v1  ;;  %v46_v15 = vadd.s32 48, %v668_v1  ;;  %p594_p4 = scmp.lt.s32.totalorder %s592_s8, %s588_s7 }
  0x2c   :  { %v675_v8 = vrot.slane %v38_v5, %v66_v2  ;;  %v677_v9 = vrot.slane %v38_v5, %v70_v3  ;;  %v47_v16 = vadd.s32 56, %v668_v1  ;;  %v48_v17 = vadd.s32 64, %v668_v1 }
  0x2d   :  { %v49_v18 = vadd.s32 72, %v668_v1  ;;  %v50_v19 = vadd.s32 80, %v668_v1  ;;  %v51_v20 = vadd.s32 88, %v668_v1  ;;  %v52_v21 = vadd.s32 96, %v668_v1  ;;  %p595_p5 = por %p594_p4, %p593_p3 }
  0x2e   :  { %vm73_vm1 = vcmp.eq.s32.totalorder %v668_v1, %v677_v9  ;;  %vm75_vm2 = vcmp.eq.s32.totalorder %v41_v4, %v677_v9  ;;  %vm72_vm3 = vcmp.eq.s32.totalorder %v668_v1, %v675_v8  ;;  %vm74_vm4 = vcmp.eq.s32.totalorder %v41_v4, %v675_v8 }
  0x2f   :  { %vm462_vm5 = vmpackc.low %vm75_vm2, %vm73_vm1  ;;  %vm77_vm6 = vcmp.eq.s32.totalorder %v42_v6, %v677_v9  ;;  %vm79_vm7 = vcmp.eq.s32.totalorder %v43_v7, %v677_v9  ;;  %vm76_vm8 = vcmp.eq.s32.totalorder %v42_v6, %v675_v8  ;;  %vm78_vm9 = vcmp.eq.s32.totalorder %v43_v7, %v675_v8  ;;  %p596_p6 = pnand %p595_p5, %p589_p2 }
  0x30   :  { %463 = vmatprep.subr.msk.bf16.mxu0 %vm462_vm5, %v620_v14  ;;  %vm464_vm10 = vmpackc.low %vm74_vm4, %vm72_vm3  ;;  %510 = vmatprep.subr.msk.bf16.mxu1 %vm462_vm5, %v620_v14  ;;  %vm81_vm11 = vcmp.eq.s32.totalorder %v44_v10, %v677_v9  ;;  %vm83_vm12 = vcmp.eq.s32.totalorder %v45_v11, %v677_v9  ;;  %vm80_vm1 = vcmp.eq.s32.totalorder %v44_v10, %v675_v8  ;;  %v53_v22 = vadd.s32 104, %v668_v1 }
  0x31   :  { %465 = vmatpush1.bf16.msk.msra.mxu0 %vm464_vm10, %v620_v14  ;;  %522 = vmatpush1.bf16.msk.msra.mxu1 %vm464_vm10, %v620_v14  ;;  %vm466_vm13 = vmpackc.low %vm79_vm7, %vm77_vm6  ;;  %vm82_vm2 = vcmp.eq.s32.totalorder %v45_v11, %v675_v8  ;;  %vm85_vm3 = vcmp.eq.s32.totalorder %v46_v15, %v677_v9  ;;  %vm87_vm4 = vcmp.eq.s32.totalorder %v47_v16, %v677_v9  ;;  %v54_v23 = vadd.s32 112, %v668_v1 }
  0x32   :  { %467 = vmatprep.subr.msk.bf16.mxu0 %vm466_vm13, %v620_v14  ;;  %vm468_vm14 = vmpackc.low %vm78_vm9, %vm76_vm8  ;;  %511 = vmatprep.subr.msk.bf16.mxu1 %vm466_vm13, %v620_v14  ;;  %vm84_vm7 = vcmp.eq.s32.totalorder %v46_v15, %v675_v8  ;;  %vm86_vm8 = vcmp.eq.s32.totalorder %v47_v16, %v675_v8  ;;  %vm89_vm9 = vcmp.eq.s32.totalorder %v48_v17, %v677_v9  ;;  %v55_v24 = vadd.s32 120, %v668_v1 }
  0x33   :  { %vm470_vm15 = vmpackc.low %vm83_vm12, %vm81_vm11  ;;  %vm91_vm10 = vcmp.eq.s32.totalorder %v49_v18, %v677_v9  ;;  %vm88_vm13 = vcmp.eq.s32.totalorder %v48_v17, %v675_v8  ;;  %v56_v25 = vadd.s32 128, %v668_v1  ;;  %v57_v26 = vadd.s32 136, %v668_v1 }
  0x34   :  { %vm472_vm5 = vmpackc.low %vm82_vm2, %vm80_vm1  ;;  %vm95_vm1 = vcmp.eq.s32.totalorder %v51_v20, %v677_v9  ;;  %v58_v27 = vadd.s32 144, %v668_v1  ;;  %v59_v28 = vadd.s32 152, %v668_v1  ;;  %v60_v29 = vadd.s32 160, %v668_v1 }
  0x35   :  { %469 = vmatpush1.bf16.msk.msra.mxu0 %vm468_vm14, %v620_v14  ;;  %523 = vmatpush1.bf16.msk.msra.mxu1 %vm468_vm14, %v620_v14  ;;  %vm474_vm6 = vmpackc.low %vm87_vm4, %vm85_vm3  ;;  %vm90_vm14 = vcmp.eq.s32.totalorder %v49_v18, %v675_v8  ;;  %vm92_vm4 = vcmp.eq.s32.totalorder %v50_v19, %v675_v8  ;;  %v61_v30 = vadd.s32 168, %v668_v1  ;;  %v62_v31 = vadd.s32 176, %v668_v1 }
  0x36   :  { %471 = vmatprep.subr.msk.bf16.mxu0 %vm470_vm15, %v620_v14  ;;  %512 = vmatprep.subr.msk.bf16.mxu1 %vm470_vm15, %v620_v14  ;;  %vm476_vm11 = vmpackc.low %vm86_vm8, %vm84_vm7  ;;  %vm93_vm15 = vcmp.eq.s32.totalorder %v50_v19, %v677_v9  ;;  %vm99_vm7 = vcmp.eq.s32.totalorder %v53_v22, %v677_v9  ;;  %v63_v32 = vadd.s32 184, %v668_v1 }
  0x37   :  { %vm478_vm12 = vmpackc.low %vm91_vm10, %vm89_vm9  ;;  %vm96_vm10 = vcmp.eq.s32.totalorder %v52_v21, %v675_v8 }
  0x38   :  { %vm480_vm2 = vmpackc.low %vm90_vm14, %vm88_vm13  ;;  %vm103_vm13 = vcmp.eq.s32.totalorder %v55_v24, %v677_v9 }
  0x39   :  { %473 = vmatpush1.bf16.msk.msra.mxu0 %vm472_vm5, %v620_v14  ;;  %524 = vmatpush1.bf16.msk.msra.mxu1 %vm472_vm5, %v620_v14  ;;  %vm482_vm3 = vmpackc.low %vm95_vm1, %vm93_vm15  ;;  %vm94_vm5 = vcmp.eq.s32.totalorder %v51_v20, %v675_v8  ;;  %vm100_vm1 = vcmp.eq.s32.totalorder %v54_v23, %v675_v8 }
  0x3a   :  { %475 = vmatprep.subr.msk.bf16.mxu0 %vm474_vm6, %v620_v14  ;;  %513 = vmatprep.subr.msk.bf16.mxu1 %vm474_vm6, %v620_v14  ;;  %vm97_vm6 = vcmp.eq.s32.totalorder %v52_v21, %v677_v9  ;;  %vm484_vm8 = vmpackc.low %vm94_vm5, %vm92_vm4  ;;  %vm107_vm4 = vcmp.eq.s32.totalorder %v57_v26, %v677_v9 }
  0x3b   :  { %vm486_vm9 = vmpackc.low %vm99_vm7, %vm97_vm6  ;;  %vm104_vm7 = vcmp.eq.s32.totalorder %v56_v25, %v675_v8 }
  0x3d   :  { %477 = vmatpush1.bf16.msk.msra.mxu0 %vm476_vm11, %v620_v14  ;;  %525 = vmatpush1.bf16.msk.msra.mxu1 %vm476_vm11, %v620_v14  ;;  %vm98_vm11 = vcmp.eq.s32.totalorder %v53_v22, %v675_v8 }
  0x3e   :  { %479 = vmatprep.subr.msk.bf16.mxu0 %vm478_vm12, %v620_v14  ;;  %514 = vmatprep.subr.msk.bf16.mxu1 %vm478_vm12, %v620_v14  ;;  %vm101_vm12 = vcmp.eq.s32.totalorder %v54_v23, %v677_v9  ;;  %vm488_vm14 = vmpackc.low %vm98_vm11, %vm96_vm10  ;;  %vm111_vm10 = vcmp.eq.s32.totalorder %v59_v28, %v677_v9 }
  0x3f   :  { %vm490_vm15 = vmpackc.low %vm103_vm13, %vm101_vm12  ;;  %vm108_vm13 = vcmp.eq.s32.totalorder %v58_v27, %v675_v8 }
  0x41   :  { %481 = vmatpush1.bf16.msk.msra.mxu0 %vm480_vm2, %v620_v14  ;;  %526 = vmatpush1.bf16.msk.msra.mxu1 %vm480_vm2, %v620_v14  ;;  %vm102_vm2 = vcmp.eq.s32.totalorder %v55_v24, %v675_v8 }
  0x42   :  { %483 = vmatprep.subr.msk.bf16.mxu0 %vm482_vm3, %v620_v14  ;;  %515 = vmatprep.subr.msk.bf16.mxu1 %vm482_vm3, %v620_v14  ;;  %vm105_vm3 = vcmp.eq.s32.totalorder %v56_v25, %v677_v9  ;;  %vm492_vm5 = vmpackc.low %vm102_vm2, %vm100_vm1  ;;  %vm115_vm1 = vcmp.eq.s32.totalorder %v61_v30, %v677_v9 }
  0x43   :  { %vm494_vm6 = vmpackc.low %vm107_vm4, %vm105_vm3  ;;  %vm112_vm4 = vcmp.eq.s32.totalorder %v60_v29, %v675_v8 }
  0x45   :  { %485 = vmatpush1.bf16.msk.msra.mxu0 %vm484_vm8, %v620_v14  ;;  %527 = vmatpush1.bf16.msk.msra.mxu1 %vm484_vm8, %v620_v14  ;;  %vm106_vm8 = vcmp.eq.s32.totalorder %v57_v26, %v675_v8 }
  0x46   :  { %487 = vmatprep.subr.msk.bf16.mxu0 %vm486_vm9, %v620_v14  ;;  %516 = vmatprep.subr.msk.bf16.mxu1 %vm486_vm9, %v620_v14  ;;  %vm109_vm9 = vcmp.eq.s32.totalorder %v58_v27, %v677_v9  ;;  %vm496_vm11 = vmpackc.low %vm106_vm8, %vm104_vm7  ;;  %vm119_vm7 = vcmp.eq.s32.totalorder %v63_v32, %v677_v9 }
  0x47   :  { %vm498_vm12 = vmpackc.low %vm111_vm10, %vm109_vm9  ;;  %vm116_vm10 = vcmp.eq.s32.totalorder %v62_v31, %v675_v8 }
  0x49   :  { %489 = vmatpush1.bf16.msk.msra.mxu0 %vm488_vm14, %v620_v14  ;;  %528 = vmatpush1.bf16.msk.msra.mxu1 %vm488_vm14, %v620_v14  ;;  %vm110_vm14 = vcmp.eq.s32.totalorder %v59_v28, %v675_v8 }
  0x4a   :  { %491 = vmatprep.subr.msk.bf16.mxu0 %vm490_vm15, %v620_v14  ;;  %517 = vmatprep.subr.msk.bf16.mxu1 %vm490_vm15, %v620_v14  ;;  %vm113_vm15 = vcmp.eq.s32.totalorder %v60_v29, %v677_v9  ;;  %vm500_vm2 = vmpackc.low %vm110_vm14, %vm108_vm13 }
  0x4b   :  { %vm502_vm3 = vmpackc.low %vm115_vm1, %vm113_vm15 }
  0x4d   :  { %493 = vmatpush1.bf16.msk.msra.mxu0 %vm492_vm5, %v620_v14  ;;  %529 = vmatpush1.bf16.msk.msra.mxu1 %vm492_vm5, %v620_v14  ;;  %vm114_vm5 = vcmp.eq.s32.totalorder %v61_v30, %v675_v8 }
  0x4e   :  { %495 = vmatprep.subr.msk.bf16.mxu0 %vm494_vm6, %v620_v14  ;;  %518 = vmatprep.subr.msk.bf16.mxu1 %vm494_vm6, %v620_v14  ;;  %vm117_vm6 = vcmp.eq.s32.totalorder %v62_v31, %v677_v9  ;;  %vm504_vm8 = vmpackc.low %vm114_vm5, %vm112_vm4 }
  0x4f   :  { %vm506_vm9 = vmpackc.low %vm119_vm7, %vm117_vm6 }
  0x51   :  { %497 = vmatpush1.bf16.msk.msra.mxu0 %vm496_vm11, %v620_v14  ;;  %530 = vmatpush1.bf16.msk.msra.mxu1 %vm496_vm11, %v620_v14  ;;  %vm118_vm11 = vcmp.eq.s32.totalorder %v63_v32, %v675_v8 }
  0x52   :  { %499 = vmatprep.subr.msk.bf16.mxu0 %vm498_vm12, %v620_v14  ;;  %519 = vmatprep.subr.msk.bf16.mxu1 %vm498_vm12, %v620_v14  ;;  %vm508_vm12 = vmpackc.low %vm118_vm11, %vm116_vm10 }
  0x55   :  { %501 = vmatpush1.bf16.msk.msra.mxu0 %vm500_vm2, %v620_v14  ;;  %531 = vmatpush1.bf16.msk.msra.mxu1 %vm500_vm2, %v620_v14 }
  0x56   :  { %503 = vmatprep.subr.msk.bf16.mxu0 %vm502_vm3, %v620_v14  ;;  %520 = vmatprep.subr.msk.bf16.mxu1 %vm502_vm3, %v620_v14 }
  0x59   :  { %505 = vmatpush1.bf16.msk.msra.mxu0 %vm504_vm8, %v620_v14  ;;  %532 = vmatpush1.bf16.msk.msra.mxu1 %vm504_vm8, %v620_v14 }
  0x5a   :  { %507 = vmatprep.subr.msk.bf16.mxu0 %vm506_vm9, %v620_v14  ;;  %521 = vmatprep.subr.msk.bf16.mxu1 %vm506_vm9, %v620_v14 }
  0x5d   :  { %509 = vmatpush1.bf16.msk.msra.mxu0 %vm508_vm12, %v620_v14  ;;  %533 = vmatpush1.bf16.msk.msra.mxu1 %vm508_vm12, %v620_v14 }
  0x60   :  { %302 = vmatmul.mubr.f32.vlgmr.msra.gmra.mrb[0].mxu0 %v216_v33  ;;  %314 = vmatmul.mubr.f32.vlgmr.msra.gmra.mrb[0].mxu1 %v220_v34 }
  0x61   :  { %459 = vmatprep.mubr.msk.f32.mxu0 %vm224_vm0, %v219_v35  ;;  %461 = vmatprep.mubr.msk.f32.mxu1 %vm224_vm0, %v223_v36 }
  0x64   :  { %308 = vmatmul.mubr.f32.gmra.mrb[2].mxu0 %v218_v37  ;;  %320 = vmatmul.mubr.f32.gmra.mrb[2].mxu1 %v222_v38 }
 0x133   :  { %v303_v39 = vpop.f32.mrb[0].mxu0  ;;  %v315_v40 = vpop.f32.mrb[0].mxu1 }
 0x134   :  { %v305_v41 = vpop.f32.mrb[1].mxu0  ;;  %v317_v42 = vpop.f32.mrb[1].mxu1 }
 0x135   :  { %v326_v43 = vmul.f32 %v305_v41, %v303_v39  ;;  %v328_v44 = vmul.f32 %v317_v42, %v315_v40 }
 0x137   :  { %v309_v45 = vpop.f32.mrb[2].mxu0  ;;  %v321_v46 = vpop.f32.mrb[2].mxu1 }
 0x138   :  { %v311_v47 = vpop.f32.mrb[3].mxu0  ;;  %v323_v48 = vpop.f32.mrb[3].mxu1 }
 0x139   :  { %v327_v49 = vmul.f32 %v311_v47, %v309_v45  ;;  %v329_v50 = vmul.f32 %v323_v48, %v321_v46 }
 0x13b   :  { %v330_v51 = vadd.f32 %v327_v49, %v326_v43 }
 0x13d   :  { %v331_v52 = vadd.f32 %v330_v51, %v328_v44 }
 0x13f   :  { %v332_v53 = vadd.f32 %v331_v52, %v329_v50 }
 0x141   :  { %v333_v54 = vrot.slane %v332_v53, 4 }
 0x143   :  { %v334_v55 = vadd.f32 %v333_v54, %v332_v53 }
 0x145   :  { %v335_v56 = vrot.slane %v334_v55, 2 }
 0x147   :  { %v336_v57 = vadd.f32 %v335_v56, %v334_v55 }
 0x149   :  { %v337_v58 = vrot.slane %v336_v57, 1 }
 0x14b   :  { %v338_v59 = vadd.f32 %v337_v58, %v336_v57 }
 0x14d   :  { %v339_v60 = vsub.f32 0.0, %v338_v59 }
 0x14f   :  { %v340_v61 = vmul.f32 1.442695, %v339_v60 }
 0x151   :  { %540 = vpow2.f32 %v340_v61 }
 0x15b   :  { %v541_v62 = vpop.eup %540 }
 0x15c   :  { %v342_v63 = vadd.f32 1.0, %v541_v62 }
 0x15e   :  { %542 = vrcp.f32 %v342_v63 }
 0x168   :  { %v543_v0 = vpop.eup %542 }
 0x169   :  { %v344_v1 = vmul.f32 10.0, %v543_v0 }
 0x16b   :  { %345 = vst [vmem:[#allocation7] sm:$0x1] %v344_v1 }
 0x16c   :  { %599 = shalt.err (!%p596_p6)
}
 0x16d   :  { %s600_s11 = scalar_lea.hbm %s815_s2, 16 }
 0x16e   :  { %p601_p7 = scmp.ne.s32.totalorder %s815_s2, %s600_s11  ;;  %p604_p8 = scmp.lt.u32.totalorder %s600_s11, %s815_s2 }
 0x170   :  { %p606_p9 = pnand %p604_p8, %p601_p7 }
 0x172   :  { %609 = shalt.err (!%p606_p9)
}
 0x173   :  { %355 = dma.vmem_to_hbm [thread:$0]  %s353_s6, 16, %s815_s2, [#allocation4]  }
 0x174   :  { %614 = dma.done.wait [#allocation4], 16  }
 0x175   :  { %615 = vsyncadd [#allocation4], 4294967280 }
 0x176   :  { %359 = vsyncpa [#allocation3], 1 }
 0x177   :  { %360 = vsyncpa [#allocation6], 1 }
 0x178   :  { %361 = vsyncpa [#allocation4], 1 }

</bundles_post_ra>
